<compile_context>
chip_gen: v7x
topology: tpu7x:2x2x1
jax: 0.10.0
libtpu: 0.0.40
codegen_flags: <defaults>
</compile_context>

<pallas_src>
import jax
import jax.numpy as jnp
from jax.experimental import pallas as pl
from jax.experimental.pallas import tpu as pltpu

_LANE = 128                               # TPU lane width
_TARGET_BLOCK_BYTES = 4 * 1024 * 1024     # ~4 MiB per block per buffer
_VMEM_LIMIT_BYTES = 32 * 1024 * 1024      # covers double-buffered in+out on all gens


def _cdiv(a, b):
    return -(-a // b)


def _round_up(x, m):
    return (x + m - 1) // m * m


def _pick_lane_width(n):
    """Largest multiple of 128 (<= 1024) that divides n exactly; else padded fallback."""
    for k in range(8, 0, -1):
        if n % (_LANE * k) == 0:
            return _LANE * k
    return min(_round_up(n, _LANE), 8 * _LANE)


def _drop_path_batched_kernel(m_ref, x_ref, o_ref):
    # m_ref: (tb, 1, 1) per-sample scale in x.dtype (VMEM, broadcast multiply)
    # x_ref, o_ref: (tb, rows, lane_w)
    o_ref[...] = (x_ref[...] * m_ref[...]).astype(o_ref.dtype)


def _drop_path_rowtiled_kernel(scale_ref, x_ref, o_ref):
    # scale_ref: (B,) float32 in SMEM (scalar prefetch) -- per-sample mask/keep_prob
    # x_ref, o_ref: (1, tm, lane_w)
    b = pl.program_id(0)
    scale = scale_ref[b].astype(x_ref.dtype)          # stay in x's dtype on the VPU
    o_ref[...] = (x_ref[...] * scale).astype(o_ref.dtype)


def drop_path_pallas(x, drop_prob: float = 0.0, training: bool = False, *,
                     rng_key=None, block_bytes: int = _TARGET_BLOCK_BYTES):
    """Pallas implementation of drop_path. x is (B, ...) of any rank >= 1."""
    if drop_prob == 0.0 or not training:
        return x
    if rng_key is None:
        raise ValueError(
            "drop_path_pallas requires an explicit rng_key when training with drop_prob > 0")
    if drop_prob >= 1.0:
        raise ValueError("drop_prob must be < 1.0 (keep_prob would be 0)")

    keep_prob = 1.0 - float(drop_prob)
    B = x.shape[0]
    orig_shape = x.shape

    # Per-sample binary mask in f32, pre-scaled by 1/keep_prob -> values {0, 1/keep_prob}.
    rand = jax.random.uniform(rng_key, (B,), dtype=jnp.float32)
    scale_f32 = jnp.floor(keep_prob + rand) * (1.0 / keep_prob)

    # Flatten non-batch dims and lay out as (B, rows, lane_w), lane-dense.
    x2 = x.reshape(B, -1)
    N = x2.shape[1]
    itemsize = jnp.dtype(x.dtype).itemsize
    sublane = max(8, 32 // itemsize)          # packed sublane count: 8 f32 / 16 bf16 / 32 int8

    lane_w = _pick_lane_width(N)
    rows = _cdiv(N, lane_w)
    total = rows * lane_w
    if total != N:                            # rare fallback; pad < lane_w elems per sample
        x2 = jnp.pad(x2, ((0, 0), (0, total - N)))
    x3 = x2.reshape(B, rows, lane_w)

    per_sample_bytes = rows * lane_w * itemsize
    cost = pl.CostEstimate(flops=B * total, transcendentals=0,
                           bytes_accessed=2 * B * total * itemsize)
    out_shape = jax.ShapeDtypeStruct((B, rows, lane_w), x.dtype)

    if per_sample_bytes <= block_bytes:
        # ---- batched path: pack tb samples per block (MB-scale DMAs for small N) ----
        tb = int(min(B, max(1, block_bytes // per_sample_bytes)))
        grid = (_cdiv(B, tb),)
        m3 = scale_f32.astype(x.dtype).reshape(B, 1, 1)
        out3 = pl.pallas_call(
            _drop_path_batched_kernel,
            out_shape=out_shape,
            grid=grid,
            in_specs=[pl.BlockSpec((tb, 1, 1), lambda i: (i, 0, 0)),
                      pl.BlockSpec((tb, rows, lane_w), lambda i: (i, 0, 0))],
            out_specs=pl.BlockSpec((tb, rows, lane_w), lambda i: (i, 0, 0)),
            compiler_params=pltpu.CompilerParams(
                dimension_semantics=("parallel",),
                vmem_limit_bytes=_VMEM_LIMIT_BYTES),
            cost_estimate=cost,
        )(m3, x3)
    else:
        # ---- row-tiled path: large per-sample tensors, SMEM scalar prefetch ----
        tm = max(sublane, (block_bytes // (lane_w * itemsize)) // sublane * sublane)
        if tm >= rows:
            tm = rows                          # full dim -> no alignment constraint
        grid = (B, _cdiv(rows, tm))            # ragged trailing block handled by Pallas
        out3 = pl.pallas_call(
            _drop_path_rowtiled_kernel,
            out_shape=out_shape,
            grid_spec=pltpu.PrefetchScalarGridSpec(
                num_scalar_prefetch=1,
                grid=grid,
                in_specs=[pl.BlockSpec((1, tm, lane_w), lambda b, r, scale: (b, r, 0))],
                out_specs=pl.BlockSpec((1, tm, lane_w), lambda b, r, scale: (b, r, 0)),
            ),
            compiler_params=pltpu.CompilerParams(
                dimension_semantics=("parallel", "parallel"),
                vmem_limit_bytes=_VMEM_LIMIT_BYTES),
            cost_estimate=cost,
        )(scale_f32, x3)

    out2 = out3.reshape(B, total)
    if total != N:
        out2 = out2[:, :N]
    return out2.reshape(orig_shape)


class DropPath:
    """Minimal JAX analogue of the PyTorch DropPath module."""

    def __init__(self, drop_prob=None):
        self.drop_prob = drop_prob if drop_prob is not None else 0.0
        self.training = True  # PyTorch modules default to training mode

    def __call__(self, x, rng_key=None):
        return drop_path_pallas(x, self.drop_prob, self.training, rng_key=rng_key)


if __name__ == "__main__":
    key = jax.random.PRNGKey(0)
    kx, kmask, kx2, kx3, kx4 = jax.random.split(key, 5)

    drop_prob = 0.25
    keep_prob = 1.0 - drop_prob

    def ref_drop_path(xx, kmask_):
        rand_ = jax.random.uniform(kmask_, (xx.shape[0],), dtype=jnp.float32)
        mask_ = jnp.floor(keep_prob + rand_).reshape(
            (xx.shape[0],) + (1,) * (xx.ndim - 1))
        return (xx.astype(jnp.float32) / keep_prob * mask_).astype(xx.dtype)

    # --- 1) main test: NCHW f32, N divisible by 1024 -> batched path, no padding ---
    x = jax.random.normal(kx, (2, 4, 16, 16), dtype=jnp.float32)
    module = DropPath(drop_prob)
    out = jax.block_until_ready(module(x, rng_key=kmask))
    ref = ref_drop_path(x, kmask)
    assert out.shape == x.shape and out.dtype == x.dtype
    assert jnp.allclose(out, ref, atol=1e-5, rtol=1e-5), "mismatch vs reference"

    # --- 2) padded fallback: flattened size not a multiple of 128 ---
    x_odd = jax.random.normal(kx2, (2, 3, 7, 5), dtype=jnp.float32)
    out_odd = jax.block_until_ready(
        drop_path_pallas(x_odd, drop_prob, True, rng_key=kmask))
    assert jnp.allclose(out_odd, ref_drop_path(x_odd, kmask),
                        atol=1e-5, rtol=1e-5), "mismatch (padded path)"

    # --- 3) row-tiled path with ragged trailing block (rows=20, tm=8) ---
    x_big = jax.random.normal(kx3, (2, 5, 32, 128), dtype=jnp.float32)
    out_big = jax.block_until_ready(
        drop_path_pallas(x_big, drop_prob, True, rng_key=kmask,
                         block_bytes=32 * 1024))
    assert jnp.allclose(out_big, ref_drop_path(x_big, kmask),
                        atol=1e-5, rtol=1e-5), "mismatch (row-tiled path)"

    # --- 4) bf16 input: scale applied in bf16 ---
    x_bf = jax.random.normal(kx4, (2, 4, 16, 16), dtype=jnp.bfloat16)
    out_bf = jax.block_until_ready(
        drop_path_pallas(x_bf, drop_prob, True, rng_key=kmask))
    assert out_bf.dtype == jnp.bfloat16
    assert jnp.allclose(out_bf.astype(jnp.float32),
                        ref_drop_path(x_bf, kmask).astype(jnp.float32),
                        atol=1e-2, rtol=3e-2), "mismatch (bf16 path)"

    # --- 5) eval mode / drop_prob=0 -> identity (no kernel launched) ---
    module.training = False
    out_eval = jax.block_until_ready(module(x))
    assert jnp.array_equal(out_eval, x)

    print("KERNEL_OK")
</pallas_src>

<mosaic_0001>
module attributes {stable_mosaic.version = 11 : i64} {
  func.func @_drop_path_batched_kernel(%arg0: i32, %arg1: memref<2x1x1xf32, #tpu.memory_space<vmem>>, %arg2: memref<2x1x1024xf32, #tpu.memory_space<vmem>>, %arg3: memref<2x1x1024xf32, #tpu.memory_space<vmem>>) attributes {dimension_semantics = [#tpu.dimension_semantics<parallel>], iteration_bounds = array<i64: 1>, scalar_prefetch = 0 : i64, scratch_operands = 0 : i64, tpu.core_type = #tpu.core_type<tc>, window_params = [{transform_indices = @transform_0, window_bounds = array<i64: 2, 1, 1>}, {transform_indices = @transform_1, window_bounds = array<i64: 2, 1, 1024>}, {transform_indices = @transform_2, window_bounds = array<i64: 2, 1, 1024>}]} {
    %c0 = arith.constant 0 : index
    %c0_0 = arith.constant 0 : index
    %c0_1 = arith.constant 0 : index
    %0 = vector.load %arg2[%c0, %c0_0, %c0_1] : memref<2x1x1024xf32, #tpu.memory_space<vmem>>, vector<2x1x1024xf32>
    %c0_2 = arith.constant 0 : index
    %c0_3 = arith.constant 0 : index
    %c0_4 = arith.constant 0 : index
    %1 = vector.load %arg1[%c0_2, %c0_3, %c0_4] : memref<2x1x1xf32, #tpu.memory_space<vmem>>, vector<2x1x1xf32>
    %2 = vector.broadcast %1 : vector<2x1x1xf32> to vector<2x1x1024xf32>
    %3 = arith.mulf %0, %2 : vector<2x1x1024xf32>
    %c0_5 = arith.constant 0 : index
    %c0_6 = arith.constant 0 : index
    %c0_7 = arith.constant 0 : index
    %4 = vector.load %arg3[%c0_5, %c0_6, %c0_7] : memref<2x1x1024xf32, #tpu.memory_space<vmem>>, vector<2x1x1024xf32>
    tpu.vector_store %arg3[%c0_5, %c0_6, %c0_7], %3 {strides = array<i32>} : memref<2x1x1024xf32, #tpu.memory_space<vmem>>, vector<2x1x1024xf32>,
    return
  }
  func.func @transform_0(%arg0: i32) -> (i32, i32, i32) {
    %c0_i32 = arith.constant 0 : i32
    %c0_i32_0 = arith.constant 0 : i32
    %c0_i32_1 = arith.constant 0 : i32
    return %arg0, %c0_i32, %c0_i32_0 : i32, i32, i32
  }
  func.func @transform_1(%arg0: i32) -> (i32, i32, i32) {
    %c0_i32 = arith.constant 0 : i32
    %c0_i32_0 = arith.constant 0 : i32
    %c0_i32_1 = arith.constant 0 : i32
    return %arg0, %c0_i32, %c0_i32_0 : i32, i32, i32
  }
  func.func @transform_2(%arg0: i32) -> (i32, i32, i32) {
    %c0_i32 = arith.constant 0 : i32
    %c0_i32_0 = arith.constant 0 : i32
    %c0_i32_1 = arith.constant 0 : i32
    return %arg0, %c0_i32, %c0_i32_0 : i32, i32, i32
  }
}

</mosaic_0001>

<bundles_post_ra>
// kernel: tpu_custom_call.1
= control target key start
LH: loop header
LB: loop body
LE: loop exit
PB: predicated region body
PF: predicated region fallthrough
CT: control target
= control target key end

     0   :  { %7 = vsyncpa [#allocation3], 0  ;;  %s179_s0 = inlined_call_operand.vmem [shape: f32[2,1,1], index: 0, kind: input, shape index: {}]   ;;  %s180_s1 = inlined_call_operand.hbm [shape: f32[2,1,1024], index: 1, kind: input, shape index: {}]   ;;  %s181_s2 = inlined_call_operand.hbm [shape: f32[2,1,1024], index: 2, kind: output, shape index: {}]  }
   0x1   :  { %8 = vsyncpa [#allocation4], 0  ;;  %s123_s9 = smov [#allocation2]   ;;  %s75_s13 = scalar_lea.hbm %s180_s1, 256 }
   0x2   :  { %s16_s10 = sshll.u32 %s123_s9, 4  ;;  %p76_p0 = scmp.ne.s32.totalorder %s180_s1, %s75_s13  ;;  %s17_s10 = int_to_ptr.vmem [resolvable:$true] %s16_s10 }
   0x3   :  { %p79_p1 = scmp.lt.u32.totalorder %s75_s13, %s180_s1 }
   0x5   :  { %p81_p2 = pnand %p79_p1, %p76_p0 }
   0x7   :  { %84 = shalt.err (!%p81_p2)
}
   0x8   :  { %s85_s18 = scalar_lea.vmem %s17_s10, 256  ;;  %p90_p4 = scmp.lt.s32.totalorder %s17_s10, %s17_s10 }
   0x9   :  { %p86_p3 = scmp.ne.s32.totalorder %s17_s10, %s85_s18  ;;  %p91_p5 = scmp.lt.s32.totalorder %s85_s18, %s85_s18 }
   0xb   :  { %p92_p6 = por %p91_p5, %p90_p4 }
   0xd   :  { %p93_p7 = pnand %p92_p6, %p86_p3 }
   0xf   :  { %96 = shalt.err (!%p93_p7)
}
  0x10   :  { %s124_s19 = smov 128   ;;  %s125_s20 = smov 8  }
  0x11   :  { %22 = dma.hbm_to_vmem [thread:$0]  %s180_s1, 256, %s17_s10, [#allocation3], %s124_s19, %s124_s19, %s125_s20  }
  0x12   :  { %119 = dma.done.wait [#allocation3], 256  }
  0x13   :  { %120 = vsyncadd [#allocation3], 4294967040  ;;  %v126_v0 = vmov 0   ;;  %v28_v1 = vld [vmem:[%s179_s0] sm:$0x1]  ;;  %v35_v3 = vlaneseq  ;;  %v27_v11 = vld [vmem:[#allocation2 + $0x8] sm:$0xff] }
  0x14   :  { %74 = vset.pattern.permute.xlu0 %v126_v0  ;;  %v29_v2 = vld [vmem:[%s179_s0 + $0x1] sm:$0x1]  ;;  %s127_s1 = smov [#allocation5]  }
  0x15   :  { %32 = vperm.xlu0 %74, %v28_v1   ;;  %v36_v4 = vshrl.u32 %v35_v3, 7  ;;  %v26_v7 = vld [vmem:[#allocation2] sm:$0xff]  ;;  %s57_s27 = sshll.u32 %s127_s1, 4  ;;  %s58_s27 = int_to_ptr.vmem [resolvable:$true] %s57_s27 }
  0x16   :  { %s97_s28 = scalar_lea.vmem %s58_s27, 256  ;;  %p102_p9 = scmp.lt.s32.totalorder %s58_s27, %s58_s27 }
  0x17   :  { %v37_v5 = vsub.s32 0, %v36_v4  ;;  %p98_p8 = scmp.ne.s32.totalorder %s58_s27, %s97_s28  ;;  %p103_p10 = scmp.lt.s32.totalorder %s97_s28, %s97_s28 }
  0x19   :  { %41 = vperm.xlu0 %74, %v29_v2   ;;  %p104_p11 = por %p103_p10, %p102_p9 }
  0x1b   :  { %p105_p12 = pnand %p104_p11, %p98_p8 }
  0x94   :  { %v33_v6 = vpop.permute.xlu0 %32 }
  0x95   :  { %v38_v8 = vrot.slane %v33_v6, %v37_v5 }
  0x97   :  { %v48_v9 = vmul.f32 %v38_v8, %v26_v7 }
  0x98   :  { %v42_v10 = vpop.permute.xlu0 %41 }
  0x99   :  { %50 = vst [vmem:[#allocation5] sm:$0xff] %v48_v9  ;;  %v47_v12 = vrot.slane %v42_v10, %v37_v5 }
  0x9b   :  { %v49_v13 = vmul.f32 %v47_v12, %v27_v11 }
  0x9d   :  { %51 = vst [vmem:[#allocation5 + $0x8] sm:$0xff] %v49_v13 }
  0x9e   :  { %108 = shalt.err (!%p105_p12)
}
  0x9f   :  { %s109_s30 = scalar_lea.hbm %s181_s2, 256 }
  0xa0   :  { %p110_p13 = scmp.ne.s32.totalorder %s181_s2, %s109_s30  ;;  %p113_p0 = scmp.lt.u32.totalorder %s109_s30, %s181_s2 }
  0xa2   :  { %p115_p1 = pnand %p113_p0, %p110_p13 }
  0xa4   :  { %118 = shalt.err (!%p115_p1)
}
  0xa5   :  { %63 = dma.vmem_to_hbm [thread:$0]  %s58_s27, 256, %s181_s2, [#allocation4], %s124_s19, %s124_s19, %s125_s20  }
  0xa6   :  { %121 = dma.done.wait [#allocation4], 256  }
  0xa7   :  { %122 = vsyncadd [#allocation4], 4294967040 }
  0xa8   :  { %67 = vsyncpa [#allocation3], 1 }
  0xa9   :  { %68 = vsyncpa [#allocation4], 1 }

</bundles_post_ra>
